<compile_context>
chip_gen: v6e
topology: v6e:2x2x1
jax: 0.10.0
libtpu: 0.0.40
codegen_flags: <defaults>
</compile_context>

<pallas_src>
import jax
import jax.numpy as jnp
from jax.experimental import pallas as pl
from jax.experimental.pallas import tpu as pltpu


def _round_up(x: int, m: int) -> int:
    return (x + m - 1) // m * m


def _pick_tile(dim: int, cap: int) -> int:
    """Largest multiple of 128 <= cap that divides round_up(dim, 128).

    Falls back to min(cap, round_up(dim, 128)) (which implies padding) if no
    exact divisor exists.
    """
    padded = _round_up(dim, 128)
    t = min(cap, padded)
    for cand in range(t, 0, -128):
        if padded % cand == 0:
            return cand
    return t


def _linear_kernel(x_ref, w_ref, b_ref, o_ref):
    """One (tm, tn) output tile; the innermost K grid axis accumulates in-place.

    x_ref: [tm, tk] bf16    w_ref: [tk, tn] bf16 (pre-transposed weight)
    b_ref: [1, tn]  f32     o_ref: [tm, tn] f32  (resident across k -> accumulator)
    """
    k = pl.program_id(2)

    @pl.when(k == 0)
    def _():
        # Initialize the accumulator with the bias (broadcast over rows).
        o_ref[...] = jnp.broadcast_to(b_ref[...], o_ref.shape)

    # bf16 x bf16 -> f32 on the MXU; plain (1,)x(0,) contraction (no transpose).
    o_ref[...] += jnp.dot(x_ref[...], w_ref[...],
                          preferred_element_type=jnp.float32)


def _linear_forward(x, w_kn, b2d, *, d_out, tm, tn, tk, vmem_limit):
    """y = x @ W^T + b with pre-prepared (padded, transposed, bf16) weight."""
    B, D_in = x.shape
    Kp, Np = w_kn.shape
    Mp = _round_up(B, tm)

    # Cast activations to the bf16 compute dtype; zero-pad (exact for matmul).
    xp = x.astype(w_kn.dtype)
    if Mp != B or Kp != D_in:
        xp = jnp.pad(xp, ((0, Mp - B), (0, Kp - D_in)))

    grid = (Mp // tm, Np // tn, Kp // tk)

    cost = pl.CostEstimate(
        flops=2 * Mp * Np * Kp,
        transcendentals=0,
        bytes_accessed=(Mp * Kp + Kp * Np) * 2 + Mp * Np * 4 + Np * 4,
    )

    out = pl.pallas_call(
        _linear_kernel,
        out_shape=jax.ShapeDtypeStruct((Mp, Np), jnp.float32),
        grid_spec=pltpu.PrefetchScalarGridSpec(
            num_scalar_prefetch=0,
            grid=grid,
            in_specs=[
                pl.BlockSpec((tm, tk), lambda i, j, k: (i, k)),   # x    [M, K]
                pl.BlockSpec((tk, tn), lambda i, j, k: (k, j)),   # W^T  [K, N]
                pl.BlockSpec((1, tn), lambda i, j, k: (0, j)),    # bias [1, N]
            ],
            out_specs=pl.BlockSpec((tm, tn), lambda i, j, k: (i, j)),
        ),
        compiler_params=pltpu.CompilerParams(
            dimension_semantics=("parallel", "parallel", "arbitrary"),
            vmem_limit_bytes=vmem_limit,
        ),
        cost_estimate=cost,
    )(xp, w_kn, b2d)

    out = out[:B, :d_out]
    if x.dtype != jnp.float32:
        # TODO(synk): a bf16-output variant could accumulate in a f32 scratch
        # and cast in-kernel instead of this wrapper-side cast.
        out = out.astype(x.dtype)
    return out


def make_ost_model(weight, bias, *, compute_dtype=jnp.bfloat16,
                   max_tm=512, max_tn=512, max_tk=512, small_batch=True):
    """Build the OSTModel forward (nn.Linear) with one-time parameter prep.

    weight: [D_out, D_in] (PyTorch nn.Linear convention), bias: [D_out].
    Returns forward(x) for x of shape [..., D_in] -> [..., D_out].
    """
    D_out, D_in = weight.shape

    tk = _pick_tile(D_in, max_tk)
    Np0 = _round_up(D_out, 128)
    tn_cap = max_tn
    if small_batch and Np0 >= 256:
        # v7x has 2 TensorCores: small-batch shapes have a single M block, so
        # keep >= 2 blocks on the (parallel) N axis for core-level sharding.
        tn_cap = min(tn_cap, _round_up(Np0 // 2, 128))
    tn = _pick_tile(D_out, tn_cap)

    Kp = _round_up(D_in, tk)
    Np = _round_up(D_out, tn)

    # --- One-time weight/bias prep (hoisted out of the forward path). ---
    w = weight
    if Np != D_out or Kp != D_in:
        w = jnp.pad(w, ((0, Np - D_out), (0, Kp - D_in)))
    # One-time transpose to [K, N]: kernel contracts (1,)x(0,), so no per-tile
    # transposed-RHS relayout competes with the MXU push inside the inner loop.
    w_kn = jnp.asarray(w.T, dtype=compute_dtype)
    b2d = bias if Np == D_out else jnp.pad(bias, (0, Np - D_out))
    b2d = b2d.reshape(1, Np).astype(jnp.float32)
    w_kn, b2d = jax.block_until_ready((w_kn, b2d))

    jit_fwd = jax.jit(
        _linear_forward,
        static_argnames=("d_out", "tm", "tn", "tk", "vmem_limit"),
    )

    def forward(x):
        lead = x.shape[:-1]
        x2 = x.reshape((-1, x.shape[-1]))
        B = x2.shape[0]
        # Maximize tm first (weight re-reads scale with Mp/tm); bf16 operands
        # want the sublane (second-minor) dim to be a multiple of 16.
        tm = min(max_tm, _round_up(B, 16))
        # Scoped-VMEM budget from the actual footprint: double-buffered bf16
        # input tiles + the resident f32 output tile, with 2x slack; capped at
        # 48 MiB so the same config is safe on v7x (64 MiB physical VMEM).
        itemsize = jnp.dtype(compute_dtype).itemsize
        vmem_bytes = (2 * (tm * tk + tk * tn) * itemsize
                      + 2 * tn * 4 + 2 * tm * tn * 4)
        vmem_limit = int(min(max(32 * 1024 * 1024, 2 * vmem_bytes),
                             48 * 1024 * 1024))
        out = jit_fwd(x2, w_kn, b2d, d_out=D_out, tm=tm, tn=tn, tk=tk,
                      vmem_limit=vmem_limit)
        return out.reshape(lead + (D_out,))

    return forward


if __name__ == "__main__":
    # Shapes exercise the full tiled grid (M=1, N=3, K=2 blocks -> real
    # K-accumulation and >=2 parallel N blocks) while staying small.
    B, D_in, D_out = 256, 768, 384

    key = jax.random.PRNGKey(0)
    k_x, k_w, k_b = jax.random.split(key, 3)

    x = jax.random.normal(k_x, (B, D_in), dtype=jnp.float32)
    # Deterministic parameters (mirrors nn.Linear's weight/bias shapes).
    weight = jax.random.normal(k_w, (D_out, D_in), dtype=jnp.float32) * 0.05
    bias = jax.random.normal(k_b, (D_out,), dtype=jnp.float32) * 0.1

    model = make_ost_model(weight, bias)      # one-time pad / transpose / bf16
    out = model(x)
    out = jax.block_until_ready(out)

    assert out.shape == (B, D_out)
    assert out.dtype == jnp.float32

    # Tight check against a reference using the same bf16-operand / f32-accum
    # arithmetic as the kernel.
    ref_bf16 = jnp.dot(x.astype(jnp.bfloat16), weight.T.astype(jnp.bfloat16),
                       preferred_element_type=jnp.float32) + bias
    assert jnp.allclose(out, ref_bf16, atol=5e-3, rtol=5e-3)

    # Loose sanity check against the full-f32 reference (bf16 rounding only).
    ref_f32 = x @ weight.T + bias
    assert jnp.allclose(out, ref_f32, atol=1e-1, rtol=1e-1)

    print("KERNEL_OK")
</pallas_src>

<mosaic_0001>
module attributes {stable_mosaic.version = 11 : i64} {
  func.func @_linear_kernel(%arg0: i32, %arg1: i32, %arg2: i32, %arg3: memref<256x384xbf16, #tpu.memory_space<vmem>>, %arg4: memref<384x128xbf16, #tpu.memory_space<vmem>>, %arg5: memref<1x128xf32, #tpu.memory_space<vmem>>, %arg6: memref<256x128xf32, #tpu.memory_space<vmem>>) attributes {dimension_semantics = [#tpu.dimension_semantics<parallel>, #tpu.dimension_semantics<parallel>, #tpu.dimension_semantics<arbitrary>], iteration_bounds = array<i64: 1, 3, 2>, scalar_prefetch = 0 : i64, scratch_operands = 0 : i64, tpu.core_type = #tpu.core_type<tc>, window_params = [{transform_indices = @transform_0, window_bounds = array<i64: 256, 384>}, {transform_indices = @transform_1, window_bounds = array<i64: 384, 128>}, {transform_indices = @transform_2, window_bounds = array<i64: 1, 128>}, {transform_indices = @transform_3, window_bounds = array<i64: 256, 128>}]} {
    %c0_i32 = arith.constant 0 : i32
    %0 = arith.cmpi eq, %arg2, %c0_i32 : i32
    %1 = arith.extui %0 : i1 to i32
    %c0_i32_0 = arith.constant 0 : i32
    %2 = arith.cmpi ne, %1, %c0_i32_0 : i32
    scf.if %2 {
      %c0_8 = arith.constant 0 : index
      %c0_9 = arith.constant 0 : index
      %9 = vector.load %arg5[%c0_8, %c0_9] : memref<1x128xf32, #tpu.memory_space<vmem>>, vector<1x128xf32>
      %10 = vector.shape_cast %9 : vector<1x128xf32> to vector<1x128xf32>
      %11 = vector.broadcast %10 : vector<1x128xf32> to vector<256x128xf32>
      %c0_10 = arith.constant 0 : index
      %c0_11 = arith.constant 0 : index
      %12 = vector.load %arg6[%c0_10, %c0_11] : memref<256x128xf32, #tpu.memory_space<vmem>>, vector<256x128xf32>
      tpu.vector_store %arg6[%c0_10, %c0_11], %11 {strides = array<i32>} : memref<256x128xf32, #tpu.memory_space<vmem>>, vector<256x128xf32>,
    } else {
    }
    %c0 = arith.constant 0 : index
    %c0_1 = arith.constant 0 : index
    %3 = vector.load %arg6[%c0, %c0_1] : memref<256x128xf32, #tpu.memory_space<vmem>>, vector<256x128xf32>
    %c0_2 = arith.constant 0 : index
    %c0_3 = arith.constant 0 : index
    %4 = vector.load %arg3[%c0_2, %c0_3] : memref<256x384xbf16, #tpu.memory_space<vmem>>, vector<256x384xbf16>
    %c0_4 = arith.constant 0 : index
    %c0_5 = arith.constant 0 : index
    %5 = vector.load %arg4[%c0_4, %c0_5] : memref<384x128xbf16, #tpu.memory_space<vmem>>, vector<384x128xbf16>
    %cst = arith.constant dense<0.000000e+00> : vector<256x128xf32>
    %6 = tpu.matmul %4, %5, %cst {dimension_numbers = #tpu.dot_dimension_numbers<[1], [0], [0], [1], [0, 0, 1, 1], [], []>} : vector<256x384xbf16>, vector<384x128xbf16>, vector<256x128xf32> -> vector<256x128xf32>
    %7 = arith.addf %3, %6 : vector<256x128xf32>
    %c0_6 = arith.constant 0 : index
    %c0_7 = arith.constant 0 : index
    %8 = vector.load %arg6[%c0_6, %c0_7] : memref<256x128xf32, #tpu.memory_space<vmem>>, vector<256x128xf32>
    tpu.vector_store %arg6[%c0_6, %c0_7], %7 {strides = array<i32>} : memref<256x128xf32, #tpu.memory_space<vmem>>, vector<256x128xf32>,
    return
  }
  func.func @transform_0(%arg0: i32, %arg1: i32, %arg2: i32) -> (i32, i32) {
    %c0_i32 = arith.constant 0 : i32
    return %arg0, %arg2 : i32, i32
  }
  func.func @transform_1(%arg0: i32, %arg1: i32, %arg2: i32) -> (i32, i32) {
    %c0_i32 = arith.constant 0 : i32
    return %arg2, %arg1 : i32, i32
  }
  func.func @transform_2(%arg0: i32, %arg1: i32, %arg2: i32) -> (i32, i32) {
    %c0_i32 = arith.constant 0 : i32
    %c0_i32_0 = arith.constant 0 : i32
    return %c0_i32, %arg1 : i32, i32
  }
  func.func @transform_3(%arg0: i32, %arg1: i32, %arg2: i32) -> (i32, i32) {
    %c0_i32 = arith.constant 0 : i32
    return %arg0, %arg1 : i32, i32
  }
}

</mosaic_0001>

<bundles_post_ra>
// kernel: _linear_forward.1
= control target key start
LH: loop header
LB: loop body
LE: loop exit
PB: predicated region body
PF: predicated region fallthrough
CT: control target
= control target key end

     0   :  { %s3091_s0 = inlined_call_operand.vmem [shape: bf16[256,768], index: 0, kind: input, shape index: {}]   ;;  %s3092_s1 = inlined_call_operand.vmem [shape: bf16[768,384], index: 1, kind: input, shape index: {}]   ;;  %s3093_s2 = inlined_call_operand.vmem [shape: f32[1,384], index: 2, kind: input, shape index: {}]   ;;  %s3094_s3 = inlined_call_operand.hbm [shape: f32[256,384], index: 3, kind: output, shape index: {}]  }
   0x1   :  { %3098 = sst [smem:[#allocation10_spill]] %s3091_s0 }
   0x2   :  { %3099 = sst [smem:[#allocation11_spill]] %s3092_s1 }
   0x3   :  { %8 = vsyncpa [#allocation5], 0 }
   0x4   :  { %10 = vsyncpa [#allocation5 + $0x1], 0  ;;  %s2436_s12 = smov 0   ;;  %s2438_s13 = smov 0  }
   0x5   :  { %s2440_s14 = smov 0   ;;  %s2442_s15 = smov 0  }
   0x6   :  { %s2444_s16 = smov 0   ;;  %s2446_s17 = smov 0  }
   0x7   :  { %s2448_s18 = smov 0   ;;  %s2450_s19 = smov 0  }
   0x8   :  { %s2452_s20 = smov 0   ;;  %s2454_s21 = smov 0  }
   0x9   :  { %s2456_s22 = smov 0   ;;  %s2458_s23 = smov 0  }
   0xa LB: > { %3100 = sst [smem:[#allocation7_spill]] %s2406_s22  ;;  %s1735_s24 = sadd.s32 4294967295, %s2410_s23   ;;  %s2410_s23 = sphi %s2458_s23, %s16_s23   ;;  %s2406_s22 = sphi %s2456_s22, %s3111_s22   ;;  %s2402_s21 = sphi %s2454_s21, %s3120_s21   ;;  %s2398_s20 = sphi %s2452_s20, %s3109_s20   ;;  %s2394_s19 = sphi %s2450_s19, %s3119_s19   ;;  %s2390_s18 = sphi %s2448_s18, %s3118_s18   ;;  %s2386_s17 = sphi %s2446_s17, %s3117_s17   ;;  %s2382_s16 = sphi %s2444_s16, %s3116_s16   ;;  %s2378_s15 = sphi %s2442_s15, %s3115_s15   ;;  %s2374_s14 = sphi %s2440_s14, %s3114_s14   ;;  %s2370_s13 = sphi %s2438_s13, %s3113_s13   ;;  %s2366_s12 = sphi %s2436_s12, %s3112_s12  }
   0xb   : > { %s1736_s25 = sadd.s32 4294967294, %s2410_s23   ;;  %s28_s26 = sadd.s32 1, %s2402_s21 }
   0xc   : > { %s31_s27 = sadd.s32 1, %s2406_s22  ;;  %p29_p0 = scmp.ge.s32.totalorder %s28_s26, 2 }
   0xd   : > { %s44_s28 = sadd.s32 1, %s2390_s18  ;;  %p51_p1 = scmp.ne.s32.totalorder %s2390_s18, %s2386_s17 }
   0xe   : > { %p52_p2 = scmp.eq.s32.totalorder %s2410_s23, 0  ;;  %s3122_s26 = smov (%p29_p0, %s28_s26), 0 }
   0xf   : > { %3101 = sst [smem:[#allocation8_spill]] %s3122_s26  ;;  %s3124_s27 = smov (!%p29_p0, %s31_s27), %s2406_s22 }
  0x10   : > { %s40_s29 = ssub.s32 %s2402_s21, %s3122_s26  ;;  %p2509_p3 = por %p52_p2, %p51_p1 }
  0x11   : > { %p33_p4 = scmp.ge.s32.totalorder %s3124_s27, 3  ;;  %p42_p5 = scmp.eq.s32.totalorder %s40_s29, 0 }
  0x12   : > { %s72_s4 = sadd.s32 1, %s2382_s16  ;;  %p79_p6 = scmp.ne.s32.totalorder %s2382_s16, %s2378_s15 }
  0x13   : > { %s3126_s27 = smov (%p33_p4, %s3124_s27), 0  ;;  %s126_s9 = sadd.s32 1, %s2374_s14 }
  0x14   : > { %3103 = sst [smem:[#allocation9_spill]] %s3126_s27  ;;  %s68_s6 = ssub.s32 %s2406_s22, %s3126_s27 }
  0x15   : > { %s2519_s5 = scalar_select %p42_p5, %s2390_s18, %s44_s28  }
  0x16   : > { %p2523_p7 = por %p79_p6, %p52_p2  ;;  %s69_s8 = sor.u32 %s68_s6, %s40_s29 }
  0x17   : > { %p124_p8 = scmp.eq.s32.totalorder %s68_s6, 0  ;;  %p70_p9 = scmp.eq.s32.totalorder %s69_s8, 0 }
  0x18   : > { %p136_p10 = scmp.ne.s32.totalorder %s2374_s14, %s2370_s13  ;;  %p137_p11 = scmp.eq.s32.totalorder %s1735_s24, 5 }
  0x19   : > { %s2529_s10 = scalar_select %p124_p8, %s2374_s14, %s126_s9  }
  0x1a   : > { %s2532_s11 = scalar_select %p70_p9, %s2382_s16, %s72_s4  }
  0x1b   : > { %p142_p12 = scmp.ne.s32.totalorder %s2370_s13, %s2366_s12  ;;  %p143_p13 = scmp.eq.s32.totalorder %s1736_s25, 5 }
  0x1c   : > { %p2538_p0 = por %p137_p11, %p136_p10  ;;  %p1738_p2 = scmp.ge.s32.totalorder %s2410_s23, 6 }
  0x1d   : > { %p2542_p1 = por %p143_p13, %p142_p12 }
  0x1e   : > { %159 = sbr.rel (%p1738_p2) target bundleno = 122 (0x7a), region = 16 }
  0x23   : > { %162 = sbr.rel (!%p2509_p3) target bundleno = 81 (0x51), region = 20  ;;  %s164_s29 = sand.u32 (%p2509_p3), 1, %s2390_s18  }
  0x24   : > { %s1885_s24 = smul.u32 (%p2509_p3), 12, %s2402_s21  ;;  %s3107_s0 = sld [smem:[#allocation10_spill]] (%p2509_p3) }
  0x25   : > { %s2086_s4 = smul.u32 (%p2509_p3), 384, %s164_s29 }
  0x27   : > { %s2559_s30 = scalar_lea.vmem (%p2509_p3), [#allocation2], %s2086_s4 }
  0x2a   : > { %s2554_s8 = scalar_lea.vmem %s3107_s0, %s1885_s24 }
  0x2b   : > { %v187_v0 = vld [vmem:[%s2554_s8] sm:$0xff]  ;;  %v189_v1 = vld [vmem:[%s2554_s8 + $0x18] sm:$0xff]  ;;  %v191_v2 = vld [vmem:[%s2554_s8 + $0x30] sm:$0xff] }
  0x2c   : > { %188 = vst [vmem:[%s2559_s30] sm:$0xff] %v187_v0  ;;  %190 = vst [vmem:[%s2559_s30 + $0xc] sm:$0xff] %v189_v1  ;;  %v193_v3 = vld [vmem:[%s2554_s8 + $0x48] sm:$0xff]  ;;  %v195_v4 = vld [vmem:[%s2554_s8 + $0x60] sm:$0xff] }
  0x2d   : > { %192 = vst [vmem:[%s2559_s30 + $0x18] sm:$0xff] %v191_v2  ;;  %v197_v5 = vld [vmem:[%s2554_s8 + $0x78] sm:$0xff]  ;;  %194 = vst [vmem:[%s2559_s30 + $0x24] sm:$0xff] %v193_v3  ;;  %v199_v6 = vld [vmem:[%s2554_s8 + $0x90] sm:$0xff] }
  0x2e   : > { %196 = vst [vmem:[%s2559_s30 + $0x30] sm:$0xff] %v195_v4  ;;  %198 = vst [vmem:[%s2559_s30 + $0x3c] sm:$0xff] %v197_v5  ;;  %v201_v7 = vld [vmem:[%s2554_s8 + $0xa8] sm:$0xff]  ;;  %v203_v8 = vld [vmem:[%s2554_s8 + $0xc0] sm:$0xff] }
  0x2f   : > { %200 = vst [vmem:[%s2559_s30 + $0x48] sm:$0xff] %v199_v6  ;;  %202 = vst [vmem:[%s2559_s30 + $0x54] sm:$0xff] %v201_v7  ;;  %v205_v9 = vld [vmem:[%s2554_s8 + $0xd8] sm:$0xff]  ;;  %v207_v10 = vld [vmem:[%s2554_s8 + $0xf0] sm:$0xff] }
  0x30   : > { %204 = vst [vmem:[%s2559_s30 + $0x60] sm:$0xff] %v203_v8  ;;  %v209_v11 = vld [vmem:[%s2554_s8 + $0x108] sm:$0xff]  ;;  %206 = vst [vmem:[%s2559_s30 + $0x6c] sm:$0xff] %v205_v9  ;;  %v211_v12 = vld [vmem:[%s2554_s8 + $0x120] sm:$0xff] }
  0x31   : > { %208 = vst [vmem:[%s2559_s30 + $0x78] sm:$0xff] %v207_v10  ;;  %210 = vst [vmem:[%s2559_s30 + $0x84] sm:$0xff] %v209_v11  ;;  %v213_v13 = vld [vmem:[%s2554_s8 + $0x138] sm:$0xff]  ;;  %v215_v14 = vld [vmem:[%s2554_s8 + $0x150] sm:$0xff] }
  0x32   : > { %212 = vst [vmem:[%s2559_s30 + $0x90] sm:$0xff] %v211_v12  ;;  %214 = vst [vmem:[%s2559_s30 + $0x9c] sm:$0xff] %v213_v13  ;;  %v217_v15 = vld [vmem:[%s2554_s8 + $0x168] sm:$0xff]  ;;  %v219_v16 = vld [vmem:[%s2554_s8 + $0x180] sm:$0xff] }
  0x33   : > { %216 = vst [vmem:[%s2559_s30 + $0xa8] sm:$0xff] %v215_v14  ;;  %v221_v17 = vld [vmem:[%s2554_s8 + $0x198] sm:$0xff]  ;;  %218 = vst [vmem:[%s2559_s30 + $0xb4] sm:$0xff] %v217_v15  ;;  %v223_v18 = vld [vmem:[%s2554_s8 + $0x1b0] sm:$0xff] }
  0x34   : > { %220 = vst [vmem:[%s2559_s30 + $0xc0] sm:$0xff] %v219_v16  ;;  %222 = vst [vmem:[%s2559_s30 + $0xcc] sm:$0xff] %v221_v17  ;;  %v225_v19 = vld [vmem:[%s2554_s8 + $0x1c8] sm:$0xff]  ;;  %v227_v20 = vld [vmem:[%s2554_s8 + $0x1e0] sm:$0xff] }
  0x35   : > { %224 = vst [vmem:[%s2559_s30 + $0xd8] sm:$0xff] %v223_v18  ;;  %226 = vst [vmem:[%s2559_s30 + $0xe4] sm:$0xff] %v225_v19  ;;  %v229_v21 = vld [vmem:[%s2554_s8 + $0x1f8] sm:$0xff]  ;;  %v231_v22 = vld [vmem:[%s2554_s8 + $0x210] sm:$0xff] }
  0x36   : > { %228 = vst [vmem:[%s2559_s30 + $0xf0] sm:$0xff] %v227_v20  ;;  %v233_v23 = vld [vmem:[%s2554_s8 + $0x228] sm:$0xff]  ;;  %230 = vst [vmem:[%s2559_s30 + $0xfc] sm:$0xff] %v229_v21  ;;  %v235_v24 = vld [vmem:[%s2554_s8 + $0x240] sm:$0xff] }
  0x37   : > { %232 = vst [vmem:[%s2559_s30 + $0x108] sm:$0xff] %v231_v22  ;;  %234 = vst [vmem:[%s2559_s30 + $0x114] sm:$0xff] %v233_v23  ;;  %v237_v25 = vld [vmem:[%s2554_s8 + $0x258] sm:$0xff]  ;;  %v239_v26 = vld [vmem:[%s2554_s8 + $0x270] sm:$0xff] }
  0x38   : > { %236 = vst [vmem:[%s2559_s30 + $0x120] sm:$0xff] %v235_v24  ;;  %238 = vst [vmem:[%s2559_s30 + $0x12c] sm:$0xff] %v237_v25  ;;  %v241_v27 = vld [vmem:[%s2554_s8 + $0x288] sm:$0xff]  ;;  %v243_v28 = vld [vmem:[%s2554_s8 + $0x2a0] sm:$0xff] }
  0x39   : > { %240 = vst [vmem:[%s2559_s30 + $0x138] sm:$0xff] %v239_v26  ;;  %v245_v29 = vld [vmem:[%s2554_s8 + $0x2b8] sm:$0xff]  ;;  %242 = vst [vmem:[%s2559_s30 + $0x144] sm:$0xff] %v241_v27  ;;  %v247_v30 = vld [vmem:[%s2554_s8 + $0x2d0] sm:$0xff] }
  0x3a   : > { %244 = vst [vmem:[%s2559_s30 + $0x150] sm:$0xff] %v243_v28  ;;  %246 = vst [vmem:[%s2559_s30 + $0x15c] sm:$0xff] %v245_v29  ;;  %v249_v31 = vld [vmem:[%s2554_s8 + $0x2e8] sm:$0xff]  ;;  %v1742_v33 = vld [vmem:[%s2554_s8 + $0x20] sm:$0xf] }
  0x3b   : > { %v1740_v32 = vld [vmem:[%s2554_s8 + $0x8] sm:$0xf]  ;;  %248 = vst [vmem:[%s2559_s30 + $0x168] sm:$0xff] %v247_v30  ;;  %250 = vst [vmem:[%s2559_s30 + $0x174] sm:$0xff] %v249_v31  ;;  %v1744_v34 = vld [vmem:[%s2554_s8 + $0x38] sm:$0xf] }
  0x3c   : > { %1741 = vst [vmem:[%s2559_s30 + $0x8] sm:$0xf] %v1740_v32  ;;  %v1746_v35 = vld [vmem:[%s2554_s8 + $0x50] sm:$0xf]  ;;  %1743 = vst [vmem:[%s2559_s30 + $0x14] sm:$0xf] %v1742_v33 }
  0x3d   : > { %1745 = vst [vmem:[%s2559_s30 + $0x20] sm:$0xf] %v1744_v34  ;;  %1747 = vst [vmem:[%s2559_s30 + $0x2c] sm:$0xf] %v1746_v35  ;;  %v1748_v36 = vld [vmem:[%s2554_s8 + $0x68] sm:$0xf] }
  0x3e   : > { %v1750_v37 = vld [vmem:[%s2554_s8 + $0x80] sm:$0xf]  ;;  %v1752_v38 = vld [vmem:[%s2554_s8 + $0x98] sm:$0xf]  ;;  %1749 = vst [vmem:[%s2559_s30 + $0x38] sm:$0xf] %v1748_v36 }
  0x3f   : > { %1751 = vst [vmem:[%s2559_s30 + $0x44] sm:$0xf] %v1750_v37  ;;  %1753 = vst [vmem:[%s2559_s30 + $0x50] sm:$0xf] %v1752_v38  ;;  %v1754_v39 = vld [vmem:[%s2554_s8 + $0xb0] sm:$0xf] }
  0x40   : > { %v1756_v40 = vld [vmem:[%s2554_s8 + $0xc8] sm:$0xf]  ;;  %v1758_v41 = vld [vmem:[%s2554_s8 + $0xe0] sm:$0xf]  ;;  %1755 = vst [vmem:[%s2559_s30 + $0x5c] sm:$0xf] %v1754_v39 }
  0x41   : > { %1757 = vst [vmem:[%s2559_s30 + $0x68] sm:$0xf] %v1756_v40  ;;  %1759 = vst [vmem:[%s2559_s30 + $0x74] sm:$0xf] %v1758_v41  ;;  %v1760_v42 = vld [vmem:[%s2554_s8 + $0xf8] sm:$0xf] }
  0x42   : > { %v1762_v43 = vld [vmem:[%s2554_s8 + $0x110] sm:$0xf]  ;;  %v1764_v44 = vld [vmem:[%s2554_s8 + $0x128] sm:$0xf]  ;;  %1761 = vst [vmem:[%s2559_s30 + $0x80] sm:$0xf] %v1760_v42 }
  0x43   : > { %1763 = vst [vmem:[%s2559_s30 + $0x8c] sm:$0xf] %v1762_v43  ;;  %1765 = vst [vmem:[%s2559_s30 + $0x98] sm:$0xf] %v1764_v44  ;;  %v1766_v45 = vld [vmem:[%s2554_s8 + $0x140] sm:$0xf] }
  0x44   : > { %v1768_v46 = vld [vmem:[%s2554_s8 + $0x158] sm:$0xf]  ;;  %v1770_v47 = vld [vmem:[%s2554_s8 + $0x170] sm:$0xf]  ;;  %1767 = vst [vmem:[%s2559_s30 + $0xa4] sm:$0xf] %v1766_v45 }
  0x45   : > { %1769 = vst [vmem:[%s2559_s30 + $0xb0] sm:$0xf] %v1768_v46  ;;  %1771 = vst [vmem:[%s2559_s30 + $0xbc] sm:$0xf] %v1770_v47  ;;  %v1772_v48 = vld [vmem:[%s2554_s8 + $0x188] sm:$0xf] }
  0x46   : > { %v1774_v49 = vld [vmem:[%s2554_s8 + $0x1a0] sm:$0xf]  ;;  %v1776_v50 = vld [vmem:[%s2554_s8 + $0x1b8] sm:$0xf]  ;;  %1773 = vst [vmem:[%s2559_s30 + $0xc8] sm:$0xf] %v1772_v48 }
  0x47   : > { %1775 = vst [vmem:[%s2559_s30 + $0xd4] sm:$0xf] %v1774_v49  ;;  %1777 = vst [vmem:[%s2559_s30 + $0xe0] sm:$0xf] %v1776_v50  ;;  %v1778_v51 = vld [vmem:[%s2554_s8 + $0x1d0] sm:$0xf] }
  0x48   : > { %v1780_v52 = vld [vmem:[%s2554_s8 + $0x1e8] sm:$0xf]  ;;  %v1782_v53 = vld [vmem:[%s2554_s8 + $0x200] sm:$0xf]  ;;  %1779 = vst [vmem:[%s2559_s30 + $0xec] sm:$0xf] %v1778_v51 }
  0x49   : > { %1781 = vst [vmem:[%s2559_s30 + $0xf8] sm:$0xf] %v1780_v52  ;;  %1783 = vst [vmem:[%s2559_s30 + $0x104] sm:$0xf] %v1782_v53  ;;  %v1784_v54 = vld [vmem:[%s2554_s8 + $0x218] sm:$0xf] }
  0x4a   : > { %v1786_v55 = vld [vmem:[%s2554_s8 + $0x230] sm:$0xf]  ;;  %v1788_v56 = vld [vmem:[%s2554_s8 + $0x248] sm:$0xf]  ;;  %1785 = vst [vmem:[%s2559_s30 + $0x110] sm:$0xf] %v1784_v54 }
  0x4b   : > { %1787 = vst [vmem:[%s2559_s30 + $0x11c] sm:$0xf] %v1786_v55  ;;  %1789 = vst [vmem:[%s2559_s30 + $0x128] sm:$0xf] %v1788_v56  ;;  %v1790_v57 = vld [vmem:[%s2554_s8 + $0x260] sm:$0xf] }
  0x4c   : > { %v1792_v58 = vld [vmem:[%s2554_s8 + $0x278] sm:$0xf]  ;;  %v1794_v59 = vld [vmem:[%s2554_s8 + $0x290] sm:$0xf]  ;;  %1791 = vst [vmem:[%s2559_s30 + $0x134] sm:$0xf] %v1790_v57 }
  0x4d   : > { %1793 = vst [vmem:[%s2559_s30 + $0x140] sm:$0xf] %v1792_v58  ;;  %1795 = vst [vmem:[%s2559_s30 + $0x14c] sm:$0xf] %v1794_v59  ;;  %v1796_v60 = vld [vmem:[%s2554_s8 + $0x2a8] sm:$0xf] }
  0x4e   : > { %v1798_v61 = vld [vmem:[%s2554_s8 + $0x2c0] sm:$0xf]  ;;  %v1800_v62 = vld [vmem:[%s2554_s8 + $0x2d8] sm:$0xf]  ;;  %1797 = vst [vmem:[%s2559_s30 + $0x158] sm:$0xf] %v1796_v60 }
  0x4f   : > { %1799 = vst [vmem:[%s2559_s30 + $0x164] sm:$0xf] %v1798_v61  ;;  %1801 = vst [vmem:[%s2559_s30 + $0x170] sm:$0xf] %v1800_v62  ;;  %v1802_v63 = vld [vmem:[%s2554_s8 + $0x2f0] sm:$0xf] }
  0x50   : > { %1803 = vst [vmem:[%s2559_s30 + $0x17c] sm:$0xf] %v1802_v63 }
  0x51 PF: > { %328 = sbr.rel (!%p2523_p7) target bundleno = 122 (0x7a), region = 46  ;;  %s330_s9 = sand.u32 (%p2523_p7), 1, %s2382_s16  }
  0x52   : > { %s2087_s29 = smul.u32 (%p2523_p7), 192, %s330_s9  ;;  %s3108_s1 = sld [smem:[#allocation11_spill]] (%p2523_p7) }
  0x53   : > { %s2097_s24 = smul.u32 (%p2523_p7), 144, %s2402_s21 }
  0x54   : > { %s2699_s7 = scalar_lea.vmem (%p2523_p7), [#allocation3], %s2087_s29 }
  0x55   : > { %s335_s4 = sadd.s32 (%p2523_p7), %s2406_s22, %s2097_s24 }
  0x56   : > { %s1804_s25 = sshll.u32 %s335_s4, 2 }
  0x58   : > { %s2694_s26 = scalar_lea.vmem %s3108_s1, %s1804_s25 }
  0x59   : > { %v354_v0 = vld [vmem:[%s2694_s26] sm:$0xf]  ;;  %v356_v1 = vld [vmem:[%s2694_s26 + $0xc] sm:$0xf]  ;;  %v358_v2 = vld [vmem:[%s2694_s26 + $0x18] sm:$0xf] }
  0x5a   : > { %355 = vst [vmem:[%s2699_s7] sm:$0xf] %v354_v0  ;;  %357 = vst [vmem:[%s2699_s7 + $0x4] sm:$0xf] %v356_v1  ;;  %v360_v3 = vld [vmem:[%s2694_s26 + $0x24] sm:$0xf] }
  0x5b   : > { %359 = vst [vmem:[%s2699_s7 + $0x8] sm:$0xf] %v358_v2  ;;  %v362_v4 = vld [vmem:[%s2694_s26 + $0x30] sm:$0xf]  ;;  %v364_v5 = vld [vmem:[%s2694_s26 + $0x3c] sm:$0xf] }
  0x5c   : > { %361 = vst [vmem:[%s2699_s7 + $0xc] sm:$0xf] %v360_v3  ;;  %363 = vst [vmem:[%s2699_s7 + $0x10] sm:$0xf] %v362_v4  ;;  %v366_v6 = vld [vmem:[%s2694_s26 + $0x48] sm:$0xf] }
  0x5d   : > { %365 = vst [vmem:[%s2699_s7 + $0x14] sm:$0xf] %v364_v5  ;;  %v368_v7 = vld [vmem:[%s2694_s26 + $0x54] sm:$0xf]  ;;  %v370_v8 = vld [vmem:[%s2694_s26 + $0x60] sm:$0xf] }
  0x5e   : > { %367 = vst [vmem:[%s2699_s7 + $0x18] sm:$0xf] %v366_v6  ;;  %369 = vst [vmem:[%s2699_s7 + $0x1c] sm:$0xf] %v368_v7  ;;  %v372_v9 = vld [vmem:[%s2694_s26 + $0x6c] sm:$0xf] }
  0x5f   : > { %371 = vst [vmem:[%s2699_s7 + $0x20] sm:$0xf] %v370_v8  ;;  %v374_v10 = vld [vmem:[%s2694_s26 + $0x78] sm:$0xf]  ;;  %v376_v11 = vld [vmem:[%s2694_s26 + $0x84] sm:$0xf] }
  0x60   : > { %373 = vst [vmem:[%s2699_s7 + $0x24] sm:$0xf] %v372_v9  ;;  %375 = vst [vmem:[%s2699_s7 + $0x28] sm:$0xf] %v374_v10  ;;  %v378_v12 = vld [vmem:[%s2694_s26 + $0x90] sm:$0xf] }
  0x61   : > { %377 = vst [vmem:[%s2699_s7 + $0x2c] sm:$0xf] %v376_v11  ;;  %v380_v13 = vld [vmem:[%s2694_s26 + $0x9c] sm:$0xf]  ;;  %v382_v14 = vld [vmem:[%s2694_s26 + $0xa8] sm:$0xf] }
  0x62   : > { %379 = vst [vmem:[%s2699_s7 + $0x30] sm:$0xf] %v378_v12  ;;  %381 = vst [vmem:[%s2699_s7 + $0x34] sm:$0xf] %v380_v13  ;;  %v384_v15 = vld [vmem:[%s2694_s26 + $0xb4] sm:$0xf] }
  0x63   : > { %383 = vst [vmem:[%s2699_s7 + $0x38] sm:$0xf] %v382_v14  ;;  %v386_v16 = vld [vmem:[%s2694_s26 + $0xc0] sm:$0xf]  ;;  %v388_v17 = vld [vmem:[%s2694_s26 + $0xcc] sm:$0xf] }
  0x64   : > { %385 = vst [vmem:[%s2699_s7 + $0x3c] sm:$0xf] %v384_v15  ;;  %387 = vst [vmem:[%s2699_s7 + $0x40] sm:$0xf] %v386_v16  ;;  %v390_v18 = vld [vmem:[%s2694_s26 + $0xd8] sm:$0xf] }
  0x65   : > { %389 = vst [vmem:[%s2699_s7 + $0x44] sm:$0xf] %v388_v17  ;;  %v392_v19 = vld [vmem:[%s2694_s26 + $0xe4] sm:$0xf]  ;;  %v394_v20 = vld [vmem:[%s2694_s26 + $0xf0] sm:$0xf] }
  0x66   : > { %391 = vst [vmem:[%s2699_s7 + $0x48] sm:$0xf] %v390_v18  ;;  %393 = vst [vmem:[%s2699_s7 + $0x4c] sm:$0xf] %v392_v19  ;;  %v396_v21 = vld [vmem:[%s2694_s26 + $0xfc] sm:$0xf] }
  0x67   : > { %395 = vst [vmem:[%s2699_s7 + $0x50] sm:$0xf] %v394_v20  ;;  %v398_v22 = vld [vmem:[%s2694_s26 + $0x108] sm:$0xf]  ;;  %v400_v23 = vld [vmem:[%s2694_s26 + $0x114] sm:$0xf] }
  0x68   : > { %397 = vst [vmem:[%s2699_s7 + $0x54] sm:$0xf] %v396_v21  ;;  %399 = vst [vmem:[%s2699_s7 + $0x58] sm:$0xf] %v398_v22  ;;  %v402_v24 = vld [vmem:[%s2694_s26 + $0x120] sm:$0xf] }
  0x69   : > { %401 = vst [vmem:[%s2699_s7 + $0x5c] sm:$0xf] %v400_v23  ;;  %v404_v25 = vld [vmem:[%s2694_s26 + $0x12c] sm:$0xf]  ;;  %v406_v26 = vld [vmem:[%s2694_s26 + $0x138] sm:$0xf] }
  0x6a   : > { %403 = vst [vmem:[%s2699_s7 + $0x60] sm:$0xf] %v402_v24  ;;  %405 = vst [vmem:[%s2699_s7 + $0x64] sm:$0xf] %v404_v25  ;;  %v408_v27 = vld [vmem:[%s2694_s26 + $0x144] sm:$0xf] }
  0x6b   : > { %407 = vst [vmem:[%s2699_s7 + $0x68] sm:$0xf] %v406_v26  ;;  %v410_v28 = vld [vmem:[%s2694_s26 + $0x150] sm:$0xf]  ;;  %v412_v29 = vld [vmem:[%s2694_s26 + $0x15c] sm:$0xf] }
  0x6c   : > { %409 = vst [vmem:[%s2699_s7 + $0x6c] sm:$0xf] %v408_v27  ;;  %411 = vst [vmem:[%s2699_s7 + $0x70] sm:$0xf] %v410_v28  ;;  %v414_v30 = vld [vmem:[%s2694_s26 + $0x168] sm:$0xf] }
  0x6d   : > { %413 = vst [vmem:[%s2699_s7 + $0x74] sm:$0xf] %v412_v29  ;;  %v416_v31 = vld [vmem:[%s2694_s26 + $0x174] sm:$0xf]  ;;  %v418_v32 = vld [vmem:[%s2694_s26 + $0x180] sm:$0xf] }
  0x6e   : > { %415 = vst [vmem:[%s2699_s7 + $0x78] sm:$0xf] %v414_v30  ;;  %417 = vst [vmem:[%s2699_s7 + $0x7c] sm:$0xf] %v416_v31  ;;  %v420_v33 = vld [vmem:[%s2694_s26 + $0x18c] sm:$0xf] }
  0x6f   : > { %419 = vst [vmem:[%s2699_s7 + $0x80] sm:$0xf] %v418_v32  ;;  %v422_v34 = vld [vmem:[%s2694_s26 + $0x198] sm:$0xf]  ;;  %v424_v35 = vld [vmem:[%s2694_s26 + $0x1a4] sm:$0xf] }
  0x70   : > { %421 = vst [vmem:[%s2699_s7 + $0x84] sm:$0xf] %v420_v33  ;;  %423 = vst [vmem:[%s2699_s7 + $0x88] sm:$0xf] %v422_v34  ;;  %v426_v36 = vld [vmem:[%s2694_s26 + $0x1b0] sm:$0xf] }
  0x71   : > { %425 = vst [vmem:[%s2699_s7 + $0x8c] sm:$0xf] %v424_v35  ;;  %v428_v37 = vld [vmem:[%s2694_s26 + $0x1bc] sm:$0xf]  ;;  %v430_v38 = vld [vmem:[%s2694_s26 + $0x1c8] sm:$0xf] }
  0x72   : > { %427 = vst [vmem:[%s2699_s7 + $0x90] sm:$0xf] %v426_v36  ;;  %429 = vst [vmem:[%s2699_s7 + $0x94] sm:$0xf] %v428_v37  ;;  %v432_v39 = vld [vmem:[%s2694_s26 + $0x1d4] sm:$0xf] }
  0x73   : > { %431 = vst [vmem:[%s2699_s7 + $0x98] sm:$0xf] %v430_v38  ;;  %v434_v40 = vld [vmem:[%s2694_s26 + $0x1e0] sm:$0xf]  ;;  %v436_v41 = vld [vmem:[%s2694_s26 + $0x1ec] sm:$0xf] }
  0x74   : > { %433 = vst [vmem:[%s2699_s7 + $0x9c] sm:$0xf] %v432_v39  ;;  %435 = vst [vmem:[%s2699_s7 + $0xa0] sm:$0xf] %v434_v40  ;;  %v438_v42 = vld [vmem:[%s2694_s26 + $0x1f8] sm:$0xf] }
  0x75   : > { %437 = vst [vmem:[%s2699_s7 + $0xa4] sm:$0xf] %v436_v41  ;;  %v440_v43 = vld [vmem:[%s2694_s26 + $0x204] sm:$0xf]  ;;  %v442_v44 = vld [vmem:[%s2694_s26 + $0x210] sm:$0xf] }
  0x76   : > { %439 = vst [vmem:[%s2699_s7 + $0xa8] sm:$0xf] %v438_v42  ;;  %441 = vst [vmem:[%s2699_s7 + $0xac] sm:$0xf] %v440_v43  ;;  %v444_v45 = vld [vmem:[%s2694_s26 + $0x21c] sm:$0xf] }
  0x77   : > { %443 = vst [vmem:[%s2699_s7 + $0xb0] sm:$0xf] %v442_v44  ;;  %v446_v46 = vld [vmem:[%s2694_s26 + $0x228] sm:$0xf]  ;;  %v448_v47 = vld [vmem:[%s2694_s26 + $0x234] sm:$0xf] }
  0x78   : > { %445 = vst [vmem:[%s2699_s7 + $0xb4] sm:$0xf] %v444_v45  ;;  %447 = vst [vmem:[%s2699_s7 + $0xb8] sm:$0xf] %v446_v46 }
  0x79   : > { %449 = vst [vmem:[%s2699_s7 + $0xbc] sm:$0xf] %v448_v47 }
  0x7a PF: > { %p1805_p3 = scmp.ge.s32.totalorder %s2410_s23, 1  ;;  %p574_p4 = scmp.lt.s32.totalorder %s2410_s23, 7 }
  0x7c   : > { %p575_p5 = pnand %p1805_p3, %p574_p4 }
  0x7d   : > { %s581_s0 = sand.u32 (!%p575_p5), 1, %s2386_s17   ;;  %s588_s8 = sand.u32 (!%p575_p5), 1, %s2378_s15  }
  0x7e   : > { %578 = sbr.rel (%p575_p5) target bundleno = 495 (0x1ef), region = 91  ;;  %s615_s30 = sand.u32 (!%p575_p5), 1, %s2370_s13  }
  0x7f   : > { %s2089_s26 = smul.u32 (!%p575_p5), 384, %s581_s0  ;;  %s1806_s29 = sshll.u32 (!%p575_p5), %s615_s30, 8 }
  0x80   : > { %s2090_s9 = smul.u32 (!%p575_p5), 192, %s588_s8  ;;  %p621_p6 = scmp.lt.s32.totalorder (!%p575_p5), %s2398_s20, 2 }
  0x81   : > { %s2806_s7 = scalar_lea.vmem (!%p575_p5), [#allocation2], %s2089_s26  ;;  %s2810_s22 = scalar_lea.vmem (!%p575_p5), [#allocation4], %s1806_s29 }
  0x82   : > { %s2808_s1 = scalar_lea.vmem (!%p575_p5), [#allocation3], %s2090_s9  ;;  %p1807_p7 = scmp.ne.s32.totalorder (!%p575_p5), %s2394_s19, 0 }
  0x83   : > { %s622_s24 = scalar_select %p621_p6, %s2398_s20, 2 }
  0x84   : > { %629 = sbr.rel (%p1807_p7) target bundleno = 154 (0x9a), region = 103 }
  0x85   : > { %s623_s6 = scalar_lea.vmem %s3093_s2, %s622_s24 }
  0x89   : > { %v1808_v48 = vld [vmem:[%s623_s6] ss:$0 sm:$0xff] }
  0x8a   : > { %637 = vst [vmem:[%s2810_s22] sm:$0xff] %v1808_v48  ;;  %638 = vst [vmem:[%s2810_s22 + $0x8] sm:$0xff] %v1808_v48 }
  0x8b   : > { %639 = vst [vmem:[%s2810_s22 + $0x10] sm:$0xff] %v1808_v48  ;;  %640 = vst [vmem:[%s2810_s22 + $0x18] sm:$0xff] %v1808_v48 }
  0x8c   : > { %641 = vst [vmem:[%s2810_s22 + $0x20] sm:$0xff] %v1808_v48  ;;  %642 = vst [vmem:[%s2810_s22 + $0x28] sm:$0xff] %v1808_v48 }
  0x8d   : > { %643 = vst [vmem:[%s2810_s22 + $0x30] sm:$0xff] %v1808_v48  ;;  %644 = vst [vmem:[%s2810_s22 + $0x38] sm:$0xff] %v1808_v48 }
  0x8e   : > { %645 = vst [vmem:[%s2810_s22 + $0x40] sm:$0xff] %v1808_v48  ;;  %646 = vst [vmem:[%s2810_s22 + $0x48] sm:$0xff] %v1808_v48 }
  0x8f   : > { %647 = vst [vmem:[%s2810_s22 + $0x50] sm:$0xff] %v1808_v48  ;;  %648 = vst [vmem:[%s2810_s22 + $0x58] sm:$0xff] %v1808_v48 }
  0x90   : > { %649 = vst [vmem:[%s2810_s22 + $0x60] sm:$0xff] %v1808_v48  ;;  %650 = vst [vmem:[%s2810_s22 + $0x68] sm:$0xff] %v1808_v48 }
  0x91   : > { %651 = vst [vmem:[%s2810_s22 + $0x70] sm:$0xff] %v1808_v48  ;;  %652 = vst [vmem:[%s2810_s22 + $0x78] sm:$0xff] %v1808_v48 }
  0x92   : > { %653 = vst [vmem:[%s2810_s22 + $0x80] sm:$0xff] %v1808_v48  ;;  %654 = vst [vmem:[%s2810_s22 + $0x88] sm:$0xff] %v1808_v48 }
  0x93   : > { %655 = vst [vmem:[%s2810_s22 + $0x90] sm:$0xff] %v1808_v48  ;;  %656 = vst [vmem:[%s2810_s22 + $0x98] sm:$0xff] %v1808_v48 }
  0x94   : > { %657 = vst [vmem:[%s2810_s22 + $0xa0] sm:$0xff] %v1808_v48  ;;  %658 = vst [vmem:[%s2810_s22 + $0xa8] sm:$0xff] %v1808_v48 }
  0x95   : > { %659 = vst [vmem:[%s2810_s22 + $0xb0] sm:$0xff] %v1808_v48  ;;  %660 = vst [vmem:[%s2810_s22 + $0xb8] sm:$0xff] %v1808_v48 }
  0x96   : > { %661 = vst [vmem:[%s2810_s22 + $0xc0] sm:$0xff] %v1808_v48  ;;  %662 = vst [vmem:[%s2810_s22 + $0xc8] sm:$0xff] %v1808_v48 }
  0x97   : > { %663 = vst [vmem:[%s2810_s22 + $0xd0] sm:$0xff] %v1808_v48  ;;  %664 = vst [vmem:[%s2810_s22 + $0xd8] sm:$0xff] %v1808_v48 }
  0x98   : > { %665 = vst [vmem:[%s2810_s22 + $0xe0] sm:$0xff] %v1808_v48  ;;  %666 = vst [vmem:[%s2810_s22 + $0xe8] sm:$0xff] %v1808_v48 }
  0x99   : > { %667 = vst [vmem:[%s2810_s22 + $0xf0] sm:$0xff] %v1808_v48  ;;  %668 = vst [vmem:[%s2810_s22 + $0xf8] sm:$0xff] %v1808_v48 }
  0x9a PF: > { %v2198_v49 = vld [vmem:[%s2808_s1 + $0x78] sm:$0xff]   ;;  %v2200_v51 = vld [vmem:[%s2808_s1 + $0x70] sm:$0xff]   ;;  %v2202_v53 = vld [vmem:[%s2808_s1 + $0x68] sm:$0xff]   ;;  %s1615_s15 = sshll.u32 %s2810_s22, 4  ;;  %s3028_s0 = scalar_lea.sflag [#allocation5], %s615_s30  ;;  %s3022_s15 = int_to_ptr.vmem [resolvable:$true] %s1615_s15 }
  0x9b   : > { %v2199_v50 = vld [vmem:[%s2808_s1 + $0x38] sm:$0xff]   ;;  %1886 = vmatprep.subr.bf16.mxu0 %v2198_v49  ;;  %2070 = vmatprep.subr.bf16.mxu1 %v2198_v49  ;;  %v2201_v52 = vld [vmem:[%s2808_s1 + $0x30] sm:$0xff]   ;;  %v2203_v54 = vld [vmem:[%s2808_s1 + $0x28] sm:$0xff]   ;;  %s2286_s8 = scalar_lea.vmem %s3022_s15, 4096  ;;  %s2412_s26 = smov [#allocation4]  }
  0x9c   : > { %1887 = vmatpush3.bf16.msra.mxu0 %v2199_v50  ;;  %2078 = vmatpush3.bf16.msra.mxu1 %v2199_v50  ;;  %v2204_v55 = vld [vmem:[%s2808_s1 + $0x60] sm:$0xff]   ;;  %v2206_v57 = vld [vmem:[%s2808_s1 + $0x58] sm:$0xff]   ;;  %v2208_v59 = vld [vmem:[%s2808_s1 + $0x50] sm:$0xff]   ;;  %p2287_p8 = scmp.ne.s32.totalorder %s3022_s15, %s2286_s8  ;;  %s2290_s9 = sshll.u32 %s2412_s26, 4  ;;  %s2291_s9 = int_to_ptr.vmem [resolvable:$false] %s2290_s9 }
  0x9d   : > { %1888 = vmatprep.subr.bf16.mxu0 %v2200_v51  ;;  %2071 = vmatprep.subr.bf16.mxu1 %v2200_v51  ;;  %v2205_v56 = vld [vmem:[%s2808_s1 + $0x20] sm:$0xff]   ;;  %v2207_v58 = vld [vmem:[%s2808_s1 + $0x18] sm:$0xff]   ;;  %v2209_v62 = vld [vmem:[%s2808_s1 + $0x10] sm:$0xff]   ;;  %s2292_s29 = scalar_lea.vmem %s2291_s9, 8192  ;;  %p2293_p11 = scmp.lt.s32.totalorder %s3022_s15, %s2291_s9 }
  0x9e   : > { %v2216_v60 = vld [vmem:[%s2806_s7 + $0x4] ss:$12 sps:$4 sm:$0xff]   ;;  %v2210_v63 = vld [vmem:[%s2808_s1 + $0x48] sm:$0xff]   ;;  %v2220_v3 = vld [vmem:[%s2808_s1 + $0xb8] sm:$0xff]   ;;  %p2288_p9 = pnand %p2287_p8, %p2538_p0  ;;  %p2294_p12 = scmp.lt.s32.totalorder %s2292_s29, %s2286_s8 }
  0x9f   : > { %v2219_v61 = vld [vmem:[%s2806_s7 + $0x124] ss:$12 sps:$4 sm:$0xff]   ;;  %1245 = vmatprep.mubr.bf16.mxu0 %v2216_v60  ;;  %v2211_v0 = vld [vmem:[%s2808_s1 + $0x8] sm:$0xff]   ;;  %v2230_v13 = vld [vmem:[%s2806_s7 + $0x34] ss:$12 sps:$4 sm:$0xff]  }
  0xa0   : > { %1889 = vmatpush3.bf16.msra.mxu0 %v2201_v52  ;;  %2079 = vmatpush3.bf16.msra.mxu1 %v2201_v52  ;;  %v2212_v1 = vld [vmem:[%s2808_s1 + $0x40] sm:$0xff]   ;;  %v2222_v6 = vld [vmem:[%s2806_s7 + $0x1c] ss:$12 sps:$4 sm:$0xff]   ;;  %v2221_v7 = vld [vmem:[%s2808_s1 + $0xb0] sm:$0xff]   ;;  %p2289_p10 = pneg %p2288_p9  ;;  %p2295_p13 = por %p2294_p12, %p2293_p11 }
  0xa1   : > { %1890 = vmatprep.subr.bf16.mxu0 %v2202_v53  ;;  %2072 = vmatprep.subr.bf16.mxu1 %v2202_v53  ;;  %v2213_v2 = vld [vmem:[%s2808_s1] sm:$0xff]   ;;  %v2224_v8 = vld [vmem:[%s2806_s7 + $0x13c] ss:$12 sps:$4 sm:$0xff]   ;;  %v2237_v18 = vld [vmem:[%s2808_s1 + $0x90] sm:$0xff]  }
  0xa2   : > { %1341 = vmatprep.mubr.bf16.mxu1 %v2219_v61  ;;  %v2214_v4 = vld [vmem:[%s2806_s7] ss:$12 sps:$4 sm:$0xff]   ;;  %v2226_v9 = vld [vmem:[%s2806_s7 + $0x18] ss:$12 sps:$4 sm:$0xff]   ;;  %v2234_v16 = vld [vmem:[%s2806_s7 + $0x30] ss:$12 sps:$4 sm:$0xff]   ;;  %p2296_p2 = pnand %p2295_p13, %p2289_p10 }
  0xa3   : > { %v2217_v5 = vld [vmem:[%s2806_s7 + $0x120] ss:$12 sps:$4 sm:$0xff]   ;;  %v2227_v11 = vld [vmem:[%s2806_s7 + $0x138] ss:$12 sps:$4 sm:$0xff]   ;;  %v2235_v17 = vld [vmem:[%s2806_s7 + $0x150] ss:$12 sps:$4 sm:$0xff]  }
  0xa4   : > { %1891 = vmatpush3.bf16.msra.mxu0 %v2203_v54  ;;  %2080 = vmatpush3.bf16.msra.mxu1 %v2203_v54  ;;  %v2228_v10 = vld [vmem:[%s2808_s1 + $0xa8] sm:$0xff]   ;;  %v2229_v12 = vld [vmem:[%s2808_s1 + $0xa0] sm:$0xff]   ;;  %v2236_v15 = vld [vmem:[%s2808_s1 + $0x98] sm:$0xff]  }
  0xa5   : > { %1892 = vmatprep.subr.bf16.mxu0 %v2204_v55  ;;  %2073 = vmatprep.subr.bf16.mxu1 %v2204_v55  ;;  %v2232_v14 = vld [vmem:[%s2806_s7 + $0x154] ss:$12 sps:$4 sm:$0xff]   ;;  %v2238_v19 = vld [vmem:[%s2806_s7 + $0x4c] ss:$12 sps:$4 sm:$0xff]   ;;  %v2246_v24 = vld [vmem:[%s2806_s7 + $0x64] ss:$12 sps:$4 sm:$0xff]  }
  0xa6   : > { %v2240_v20 = vld [vmem:[%s2806_s7 + $0x16c] ss:$12 sps:$4 sm:$0xff]   ;;  %v2242_v22 = vld [vmem:[%s2806_s7 + $0x48] ss:$12 sps:$4 sm:$0xff]   ;;  %v2245_v25 = vld [vmem:[%s2808_s1 + $0x80] sm:$0xff]  }
  0xa7   : > { %v2244_v21 = vld [vmem:[%s2808_s1 + $0x88] sm:$0xff]   ;;  %v2253_v30 = vld [vmem:[%s2806_s7 + $0x38] ss:$12 sps:$4 sm:$0xff]   ;;  %v2255_v32 = vld [vmem:[%s2806_s7 + $0x50] ss:$12 sps:$4 sm:$0xff]   ;;  %s1882_s1 = sshll.u32 %s2398_s20, 7 }
  0xa8   : > { %1893 = vmatpush3.bf16.msra.mxu0 %v2205_v56  ;;  %2081 = vmatpush3.bf16.msra.mxu1 %v2205_v56  ;;  %v2243_v23 = vld [vmem:[%s2806_s7 + $0x168] ss:$12 sps:$4 sm:$0xff]   ;;  %v2249_v27 = vld [vmem:[%s2806_s7 + $0x60] ss:$12 sps:$4 sm:$0xff]   ;;  %v2254_v31 = vld [vmem:[%s2806_s7 + $0x78] ss:$12 sps:$4 sm:$0xff]   ;;  %s3020_s20 = scalar_lea.hbm %s3094_s3, %s1882_s1 }
  0xa9   : > { %1894 = vmatprep.subr.bf16.mxu0 %v2206_v57  ;;  %2074 = vmatprep.subr.bf16.mxu1 %v2206_v57  ;;  %v2248_v26 = vld [vmem:[%s2806_s7 + $0x8] ss:$12 sps:$4 sm:$0xff]   ;;  %v2250_v28 = vld [vmem:[%s2806_s7 + $0x20] ss:$12 sps:$4 sm:$0xff]   ;;  %v2259_v35 = vld [vmem:[%s2806_s7 + $0x90] ss:$12 sps:$4 sm:$0xff]  }
  0xaa   : > { %v2251_v29 = vld [vmem:[%s2806_s7 + $0x7c] ss:$12 sps:$4 sm:$0xff]   ;;  %v2256_v33 = vld [vmem:[%s2806_s7 + $0x94] ss:$12 sps:$4 sm:$0xff]   ;;  %v2261_v37 = vld [vmem:[%s2806_s7 + $0xac] ss:$12 sps:$4 sm:$0xff]  }
  0xab   : > { %v2258_v34 = vld [vmem:[%s2806_s7 + $0x68] ss:$12 sps:$4 sm:$0xff]   ;;  %v2260_v36 = vld [vmem:[%s2806_s7 + $0x80] ss:$12 sps:$4 sm:$0xff]   ;;  %v2263_v38 = vld [vmem:[%s2806_s7 + $0x98] ss:$12 sps:$4 sm:$0xff]  }
  0xac   : > { %1895 = vmatpush3.bf16.msra.mxu0 %v2207_v58  ;;  %2082 = vmatpush3.bf16.msra.mxu1 %v2207_v58  ;;  %v2264_v39 = vld [vmem:[%s2806_s7 + $0xa8] ss:$12 sps:$4 sm:$0xff]   ;;  %v2265_v40 = vld [vmem:[%s2806_s7 + $0xb0] ss:$12 sps:$4 sm:$0xff]   ;;  %v2269_v43 = vld [vmem:[%s2806_s7 + $0xc0] ss:$12 sps:$4 sm:$0xff]  }
  0xad   : > { %1896 = vmatprep.subr.bf16.mxu0 %v2208_v59  ;;  %2075 = vmatprep.subr.bf16.mxu1 %v2208_v59  ;;  %v2266_v41 = vld [vmem:[%s2806_s7 + $0xc4] ss:$12 sps:$4 sm:$0xff]   ;;  %v2268_v42 = vld [vmem:[%s2806_s7 + $0xc8] ss:$12 sps:$4 sm:$0xff]   ;;  %v2270_v44 = vld [vmem:[%s2806_s7 + $0xe0] ss:$12 sps:$4 sm:$0xff]  }
  0xae   : > { %v2271_v45 = vld [vmem:[%s2806_s7 + $0xdc] ss:$12 sps:$4 sm:$0xff]   ;;  %v2273_v46 = vld [vmem:[%s2806_s7 + $0xf8] ss:$12 sps:$4 sm:$0xff]   ;;  %v2276_v49 = vld [vmem:[%s2806_s7 + $0xf4] ss:$12 sps:$4 sm:$0xff]  }
  0xaf   : > { %v2274_v47 = vld [vmem:[%s2806_s7 + $0xd8] ss:$12 sps:$4 sm:$0xff]   ;;  %v2275_v48 = vld [vmem:[%s2806_s7 + $0x110] ss:$12 sps:$4 sm:$0xff]   ;;  %v2278_v50 = vld [vmem:[%s2806_s7 + $0x128] ss:$12 sps:$4 sm:$0xff]  }
  0xb0   : > { %1897 = vmatpush3.bf16.msra.mxu0 %v2209_v62  ;;  %2083 = vmatpush3.bf16.msra.mxu1 %v2209_v62  ;;  %v2279_v51 = vld [vmem:[%s2806_s7 + $0xf0] ss:$12 sps:$4 sm:$0xff]   ;;  %v2280_v52 = vld [vmem:[%s2806_s7 + $0x140] ss:$12 sps:$4 sm:$0xff]   ;;  %v2283_v54 = vld [vmem:[%s2806_s7 + $0x158] ss:$12 sps:$4 sm:$0xff]  }
  0xb1   : > { %1898 = vmatprep.subr.bf16.mxu0 %v2210_v63  ;;  %2076 = vmatprep.subr.bf16.mxu1 %v2210_v63  ;;  %v2281_v53 = vld [vmem:[%s2806_s7 + $0x10c] ss:$12 sps:$4 sm:$0xff]   ;;  %v2284_v55 = vld [vmem:[%s2806_s7 + $0x108] ss:$12 sps:$4 sm:$0xff]   ;;  %v2285_v56 = vld [vmem:[%s2806_s7 + $0x170] ss:$12 sps:$4 sm:$0xff]  }
  0xb4   : > { %1899 = vmatpush3.bf16.msra.mxu0 %v2211_v0  ;;  %2084 = vmatpush3.bf16.msra.mxu1 %v2211_v0 }
  0xb5   : > { %1900 = vmatprep.subr.bf16.mxu0 %v2212_v1  ;;  %2077 = vmatprep.subr.bf16.mxu1 %v2212_v1 }
  0xb8   : > { %1901 = vmatpush3.bf16.msra.mxu0 %v2213_v2  ;;  %2085 = vmatpush3.bf16.msra.mxu1 %v2213_v2 }
  0xb9   : > { %2022 = vmatprep.subr.bf16.mxu1 %v2220_v3 }
  0xbb   : > { %1246 = vmatmul.mubr.bf16.vlgmr.msra.gmra.mxu0 %v2214_v4  ;;  %1342 = vmatmul.mubr.bf16.vlgmr.msra.gmra.mxu1 %v2217_v5 }
  0xbc   : > { %2023 = vmatpush3.bf16.msra.mxu1 %v2220_v3  ;;  %1253 = vmatprep.mubr.bf16.mxu0 %v2222_v6 }
  0xbd   : > { %2024 = vmatprep.subr.bf16.mxu1 %v2221_v7  ;;  %1349 = vmatprep.mubr.bf16.mxu1 %v2224_v8 }
  0xc0   : > { %2025 = vmatpush3.bf16.msra.mxu1 %v2221_v7 }
  0xc1   : > { %2026 = vmatprep.subr.bf16.mxu1 %v2228_v10 }
  0xc3   : > { %1254 = vmatmul.mubr.bf16.gmra.mxu0 %v2226_v9  ;;  %1350 = vmatmul.mubr.bf16.gmra.mxu1 %v2227_v11 }
  0xc4   : > { %2027 = vmatpush3.bf16.msra.mxu1 %v2228_v10  ;;  %1261 = vmatprep.mubr.bf16.mxu0 %v2230_v13 }
  0xc5   : > { %2028 = vmatprep.subr.bf16.mxu1 %v2229_v12  ;;  %1357 = vmatprep.mubr.bf16.mxu1 %v2232_v14 }
  0xc8   : > { %2029 = vmatpush3.bf16.msra.mxu1 %v2229_v12 }
  0xc9   : > { %2030 = vmatprep.subr.bf16.mxu1 %v2236_v15 }
  0xcb   : > { %1262 = vmatmul.mubr.bf16.gmra.mxu0 %v2234_v16  ;;  %1358 = vmatmul.mubr.bf16.gmra.mxu1 %v2235_v17 }
  0xcc   : > { %2031 = vmatpush3.bf16.msra.mxu1 %v2236_v15  ;;  %1269 = vmatprep.mubr.bf16.mxu0 %v2238_v19 }
  0xcd   : > { %2032 = vmatprep.subr.bf16.mxu1 %v2237_v18  ;;  %1365 = vmatprep.mubr.bf16.mxu1 %v2240_v20 }
  0xd0   : > { %2033 = vmatpush3.bf16.msra.mxu1 %v2237_v18 }
  0xd1   : > { %2034 = vmatprep.subr.bf16.mxu1 %v2244_v21 }
  0xd3   : > { %1270 = vmatmul.mubr.bf16.gmra.mxu0 %v2242_v22  ;;  %1366 = vmatmul.mubr.bf16.gmra.mxu1 %v2243_v23 }
  0xd4   : > { %2035 = vmatpush3.bf16.msra.mxu1 %v2244_v21  ;;  %1277 = vmatprep.mubr.bf16.mxu0 %v2246_v24 }
  0xd5   : > { %2036 = vmatprep.subr.bf16.mxu1 %v2245_v25  ;;  %2038 = vmatprep.mubr.bf16.mxu1 %v2248_v26 }
  0xd8   : > { %2037 = vmatpush3.bf16.msra.mxu1 %v2245_v25 }
  0xdb   : > { %1278 = vmatmul.mubr.bf16.gmra.mxu0 %v2249_v27  ;;  %2039 = vmatmul.mubr.bf16.vlgmr.msra.gmra.mxu1 %v2250_v28 }
  0xdc   : > { %1285 = vmatprep.mubr.bf16.mxu0 %v2251_v29  ;;  %2042 = vmatprep.mubr.bf16.mxu1 %v2253_v30 }
  0xe3   : > { %1286 = vmatmul.mubr.bf16.gmra.mxu0 %v2254_v31  ;;  %2043 = vmatmul.mubr.bf16.gmra.mxu1 %v2255_v32 }
  0xe4   : > { %1293 = vmatprep.mubr.bf16.mxu0 %v2256_v33  ;;  %2046 = vmatprep.mubr.bf16.mxu1 %v2258_v34  ;;  %v671_v33 = vld [vmem:[%s2810_s22 + $0x10] sm:$0xff] }
  0xeb   : > { %1294 = vmatmul.mubr.bf16.gmra.mxu0 %v2259_v35  ;;  %2047 = vmatmul.mubr.bf16.gmra.mxu1 %v2260_v36 }
  0xec   : > { %1301 = vmatprep.mubr.bf16.mxu0 %v2261_v37  ;;  %2050 = vmatprep.mubr.bf16.mxu1 %v2263_v38  ;;  %v669_v38 = vld [vmem:[%s2810_s22] sm:$0xff] }
  0xf3   : > { %1302 = vmatmul.mubr.bf16.gmra.mxu0 %v2264_v39  ;;  %2051 = vmatmul.mubr.bf16.gmra.mxu1 %v2265_v40 }
  0xf4   : > { %1309 = vmatprep.mubr.bf16.mxu0 %v2266_v41  ;;  %2054 = vmatprep.mubr.bf16.mxu1 %v2268_v42 }
  0xfb   : > { %1310 = vmatmul.mubr.bf16.gmra.mxu0 %v2269_v43  ;;  %2055 = vmatmul.mubr.bf16.gmra.mxu1 %v2270_v44  ;;  %v672_v44 = vld [vmem:[%s2810_s22 + $0x18] sm:$0xff] }
  0xfc   : > { %1317 = vmatprep.mubr.bf16.mxu0 %v2271_v45  ;;  %2058 = vmatprep.mubr.bf16.mxu1 %v2273_v46 }
 0x103   : > { %1318 = vmatmul.mubr.bf16.gmra.mxu0 %v2274_v47  ;;  %2059 = vmatmul.mubr.bf16.gmra.mxu1 %v2275_v48 }
 0x104   : > { %1325 = vmatprep.mubr.bf16.mxu0 %v2276_v49  ;;  %2062 = vmatprep.mubr.bf16.mxu1 %v2278_v50  ;;  %v670_v50 = vld [vmem:[%s2810_s22 + $0x8] sm:$0xff] }
 0x10b   : > { %1326 = vmatmul.mubr.bf16.gmra.mxu0 %v2279_v51  ;;  %2063 = vmatmul.mubr.bf16.gmra.mxu1 %v2280_v52 }
 0x10c   : > { %1333 = vmatprep.mubr.bf16.mxu0 %v2281_v53  ;;  %2066 = vmatprep.mubr.bf16.mxu1 %v2283_v54 }
 0x113   : > { %1334 = vmatmul.mubr.bf16.gmra.mxu0 %v2284_v55  ;;  %2067 = vmatmul.mubr.bf16.gmra.mxu1 %v2285_v56  ;;  %v675_v56 = vld [vmem:[%s2810_s22 + $0x30] sm:$0xff] }
 0x17b   : > { %v1902_v57 = vpop.f32.mrf.mxu0  ;;  %v1974_v58 = vpop.f32.mrf.mxu1 }
 0x17d   : > { %v1903_v59 = vpop.f32.mrf.mxu0  ;;  %v1975_v60 = vpop.f32.mrf.mxu1 }
 0x17e   : > { %v2917_v61 = vadd.f32 %v1975_v60, %v1974_v58  ;;  %v1904_v35 = vadd.f32 %v1903_v59, %v1902_v57 }
 0x17f   : > { %v1905_v62 = vpop.f32.mrf.mxu0  ;;  %v1977_v63 = vpop.f32.mrf.mxu1 }
 0x181   : > { %v1906_v0 = vpop.f32.mrf.mxu0  ;;  %v1978_v1 = vpop.f32.mrf.mxu1 }
 0x182   : > { %v2919_v2 = vadd.f32 %v1978_v1, %v1977_v63  ;;  %v1907_v46 = vadd.f32 %v1906_v0, %v1905_v62  ;;  %v673_v63 = vld [vmem:[%s2810_s22 + $0x20] sm:$0xff] }
 0x183   : > { %v1908_v3 = vpop.f32.mrf.mxu0  ;;  %v1980_v4 = vpop.f32.mrf.mxu1 }
 0x185   : > { %v1909_v5 = vpop.f32.mrf.mxu0  ;;  %v1981_v6 = vpop.f32.mrf.mxu1 }
 0x186   : > { %v2921_v7 = vadd.f32 %v1981_v6, %v1980_v4  ;;  %v1910_v31 = vadd.f32 %v1909_v5, %v1908_v3  ;;  %v676_v6 = vld [vmem:[%s2810_s22 + $0x38] sm:$0xff] }
 0x187   : > { %v1911_v8 = vpop.f32.mrf.mxu0  ;;  %v1983_v9 = vpop.f32.mrf.mxu1 }
 0x189   : > { %v1912_v10 = vpop.f32.mrf.mxu0  ;;  %v1984_v11 = vpop.f32.mrf.mxu1 }
 0x18a   : > { %v2923_v12 = vadd.f32 %v1984_v11, %v1983_v9  ;;  %v1913_v40 = vadd.f32 %v1912_v10, %v1911_v8 }
 0x18b   : > { %v1914_v13 = vpop.f32.mrf.mxu0  ;;  %v1986_v14 = vpop.f32.mrf.mxu1 }
 0x18d   : > { %v1915_v15 = vpop.f32.mrf.mxu0  ;;  %v1987_v16 = vpop.f32.mrf.mxu1 }
 0x18e   : > { %v2925_v17 = vadd.f32 %v1987_v16, %v1986_v14  ;;  %v1916_v58 = vadd.f32 %v1915_v15, %v1914_v13  ;;  %v674_v14 = vld [vmem:[%s2810_s22 + $0x28] sm:$0xff] }
 0x18f   : > { %v1917_v18 = vpop.f32.mrf.mxu0  ;;  %v1989_v19 = vpop.f32.mrf.mxu1 }
 0x191   : > { %v1918_v20 = vpop.f32.mrf.mxu0  ;;  %v1990_v21 = vpop.f32.mrf.mxu1 }
 0x192   : > { %v2927_v22 = vadd.f32 %v1990_v21, %v1989_v19  ;;  %v1919_v9 = vadd.f32 %v1918_v20, %v1917_v18 }
 0x193   : > { %v1920_v23 = vpop.f32.mrf.mxu0  ;;  %v2929_v24 = vpop.f32.mrf.mxu1 }
 0x195   : > { %v1921_v25 = vpop.f32.mrf.mxu0  ;;  %v2931_v26 = vpop.f32.mrf.mxu1 }
 0x196   : > { %v1922_v52 = vadd.f32 %v1921_v25, %v1920_v23  ;;  %v679_v25 = vld [vmem:[%s2810_s22 + $0x50] sm:$0xff] }
 0x197   : > { %v1923_v27 = vpop.f32.mrf.mxu0  ;;  %v2933_v28 = vpop.f32.mrf.mxu1 }
 0x199   : > { %v1924_v29 = vpop.f32.mrf.mxu0  ;;  %v2935_v30 = vpop.f32.mrf.mxu1 }
 0x19a   : > { %v1925_v1 = vadd.f32 %v1924_v29, %v1923_v27 }
 0x19b   : > { %v1926_v32 = vpop.f32.mrf.mxu0  ;;  %v2040_v34 = vpop.f32.mrf.mxu1 }
 0x19c   : > { %v1417_v36 = vadd.f32 %v2040_v34, %v1910_v31 }
 0x19d   : > { %v1927_v37 = vpop.f32.mrf.mxu0  ;;  %v1408_v39 = vpop.f32.mrf.mxu1 }
 0x19e   : > { %v1537_v41 = vadd.f32 %v1417_v36, %v671_v33  ;;  %v1409_v42 = vadd.f32 %v1904_v35, %v1408_v39  ;;  %v1928_v29 = vadd.f32 %v1927_v37, %v1926_v32  ;;  %v677_v33 = vld [vmem:[%s2810_s22 + $0x40] sm:$0xff] }
 0x19f   : > { %v1929_v43 = vpop.f32.mrf.mxu0  ;;  %v2041_v45 = vpop.f32.mrf.mxu1 }
 0x1a0   : > { %1569 = vst [vmem:[%s2810_s22 + $0x10] sm:$0xff] %v1537_v41  ;;  %v1535_v47 = vadd.f32 %v1409_v42, %v669_v38  ;;  %v1420_v48 = vadd.f32 %v2041_v45, %v1913_v40  ;;  %v680_v40 = vld [vmem:[%s2810_s22 + $0x58] sm:$0xff]  ;;  %v678_v45 = vld [vmem:[%s2810_s22 + $0x48] sm:$0xff] }
 0x1a1   : > { %v1930_v49 = vpop.f32.mrf.mxu0  ;;  %v1411_v51 = vpop.f32.mrf.mxu1 }
 0x1a2   : > { %1567 = vst [vmem:[%s2810_s22] sm:$0xff] %v1535_v47  ;;  %v1538_v53 = vadd.f32 %v1420_v48, %v672_v44  ;;  %v1412_v54 = vadd.f32 %v1907_v46, %v1411_v51  ;;  %v1931_v42 = vadd.f32 %v1930_v49, %v1929_v43  ;;  %v681_v43 = vld [vmem:[%s2810_s22 + $0x60] sm:$0xff] }
 0x1a3   : > { %v1932_v55 = vpop.f32.mrf.mxu0  ;;  %v2044_v57 = vpop.f32.mrf.mxu1 }
 0x1a4   : > { %1570 = vst [vmem:[%s2810_s22 + $0x18] sm:$0xff] %v1538_v53  ;;  %v1536_v59 = vadd.f32 %v1412_v54, %v670_v50  ;;  %v1433_v60 = vadd.f32 %v2044_v57, %v1922_v52  ;;  %v683_v57 = vld [vmem:[%s2810_s22 + $0x70] sm:$0xff] }
 0x1a5   : > { %v1933_v62 = vpop.f32.mrf.mxu0  ;;  %v1424_v0 = vpop.f32.mrf.mxu1 }
 0x1a6   : > { %1568 = vst [vmem:[%s2810_s22 + $0x8] sm:$0xff] %v1536_v59  ;;  %v1541_v3 = vadd.f32 %v1433_v60, %v675_v56  ;;  %v1425_v4 = vadd.f32 %v1916_v58, %v1424_v0  ;;  %v1934_v16 = vadd.f32 %v1933_v62, %v1932_v55 }
 0x1a7   : > { %v1935_v5 = vpop.f32.mrf.mxu0  ;;  %v2045_v8 = vpop.f32.mrf.mxu1 }
 0x1a8   : > { %1573 = vst [vmem:[%s2810_s22 + $0x30] sm:$0xff] %v1541_v3  ;;  %v1539_v10 = vadd.f32 %v1425_v4, %v673_v63  ;;  %v1436_v11 = vadd.f32 %v2045_v8, %v1925_v1  ;;  %v682_v1 = vld [vmem:[%s2810_s22 + $0x68] sm:$0xff]  ;;  %v684_v8 = vld [vmem:[%s2810_s22 + $0x78] sm:$0xff] }
 0x1a9   : > { %v1936_v13 = vpop.f32.mrf.mxu0  ;;  %v1427_v15 = vpop.f32.mrf.mxu1 }
 0x1aa   : > { %1571 = vst [vmem:[%s2810_s22 + $0x20] sm:$0xff] %v1539_v10  ;;  %v1542_v19 = vadd.f32 %v1436_v11, %v676_v6  ;;  %v1428_v21 = vadd.f32 %v1919_v9, %v1427_v15  ;;  %v1937_v35 = vadd.f32 %v1936_v13, %v1935_v5 }
 0x1ab   : > { %v1938_v23 = vpop.f32.mrf.mxu0  ;;  %v2048_v27 = vpop.f32.mrf.mxu1 }
 0x1ac   : > { %1574 = vst [vmem:[%s2810_s22 + $0x38] sm:$0xff] %v1542_v19  ;;  %v1540_v18 = vadd.f32 %v1428_v21, %v674_v14  ;;  %v1449_v20 = vadd.f32 %v2048_v27, %v1934_v16  ;;  %v685_v21 = vld [vmem:[%s2810_s22 + $0x80] sm:$0xff] }
 0x1ad   : > { %v1939_v31 = vpop.f32.mrf.mxu0  ;;  %v1440_v34 = vpop.f32.mrf.mxu1 }
 0x1ae   : > { %1572 = vst [vmem:[%s2810_s22 + $0x28] sm:$0xff] %v1540_v18  ;;  %v1545_v36 = vadd.f32 %v1449_v20, %v679_v25  ;;  %v1441_v38 = vadd.f32 %v1928_v29, %v1440_v34  ;;  %v1940_v52 = vadd.f32 %v1939_v31, %v1938_v23 }
 0x1af   : > { %v1941_v39 = vpop.f32.mrf.mxu0  ;;  %v2049_v41 = vpop.f32.mrf.mxu1 }
 0x1b0   : > { %1577 = vst [vmem:[%s2810_s22 + $0x50] sm:$0xff] %v1545_v36  ;;  %v1543_v32 = vadd.f32 %v1441_v38, %v677_v33  ;;  %v1452_v37 = vadd.f32 %v2049_v41, %v1937_v35  ;;  %v686_v33 = vld [vmem:[%s2810_s22 + $0x88] sm:$0xff] }
 0x1b1   : > { %v1942_v44 = vpop.f32.mrf.mxu0  ;;  %v1443_v46 = vpop.f32.mrf.mxu1 }
 0x1b2   : > { %1575 = vst [vmem:[%s2810_s22 + $0x40] sm:$0xff] %v1543_v32  ;;  %v1546_v47 = vadd.f32 %v1452_v37, %v680_v40  ;;  %v1444_v48 = vadd.f32 %v1931_v42, %v1443_v46  ;;  %v1943_v60 = vadd.f32 %v1942_v44, %v1941_v39  ;;  %v687_v42 = vld [vmem:[%s2810_s22 + $0x90] sm:$0xff] }
 0x1b3   : > { %v1944_v50 = vpop.f32.mrf.mxu0  ;;  %v2052_v51 = vpop.f32.mrf.mxu1 }
 0x1b4   : > { %1578 = vst [vmem:[%s2810_s22 + $0x58] sm:$0xff] %v1546_v47  ;;  %v1544_v53 = vadd.f32 %v1444_v48, %v678_v45 }
 0x1b5   : > { %v1945_v54 = vpop.f32.mrf.mxu0  ;;  %v1456_v49 = vpop.f32.mrf.mxu1 }
 0x1b6   : > { %1576 = vst [vmem:[%s2810_s22 + $0x48] sm:$0xff] %v1544_v53  ;;  %v1946_v55 = vadd.f32 %v1945_v54, %v1944_v50  ;;  %v1457_v56 = vadd.f32 %v1940_v52, %v1456_v49  ;;  %v688_v50 = vld [vmem:[%s2810_s22 + $0x98] sm:$0xff]  ;;  %v695_v52 = vld [vmem:[%s2810_s22 + $0xd0] sm:$0xff] }
 0x1b7   : > { %v1947_v58 = vpop.f32.mrf.mxu0  ;;  %v2053_v59 = vpop.f32.mrf.mxu1 }
 0x1b8   : > { %v1465_v62 = vadd.f32 %v2052_v51, %v1946_v55  ;;  %v1547_v63 = vadd.f32 %v1457_v56, %v681_v43  ;;  %v693_v55 = vld [vmem:[%s2810_s22 + $0xc0] sm:$0xff] }
 0x1b9   : > { %v1948_v0 = vpop.f32.mrf.mxu0  ;;  %v1459_v3 = vpop.f32.mrf.mxu1 }
 0x1ba   : > { %v1549_v4 = vadd.f32 %v1465_v62, %v683_v57  ;;  %1579 = vst [vmem:[%s2810_s22 + $0x60] sm:$0xff] %v1547_v63  ;;  %v1949_v5 = vadd.f32 %v1948_v0, %v1947_v58  ;;  %v1460_v6 = vadd.f32 %v1943_v60, %v1459_v3  ;;  %v689_v62 = vld [vmem:[%s2810_s22 + $0xa0] sm:$0xff]  ;;  %v696_v0 = vld [vmem:[%s2810_s22 + $0xd8] sm:$0xff] }
 0x1bb   : > { %v1950_v9 = vpop.f32.mrf.mxu0  ;;  %v2056_v10 = vpop.f32.mrf.mxu1 }
 0x1bc   : > { %1581 = vst [vmem:[%s2810_s22 + $0x70] sm:$0xff] %v1549_v4  ;;  %v1468_v11 = vadd.f32 %v2053_v59, %v1949_v5  ;;  %v1548_v13 = vadd.f32 %v1460_v6, %v682_v1  ;;  %v1994_v5 = vadd.f32 %v2931_v26, %v2929_v24 }
 0x1bd   : > { %v1951_v14 = vpop.f32.mrf.mxu0  ;;  %v1472_v15 = vpop.f32.mrf.mxu1 }
 0x1be   : > { %v1550_v16 = vadd.f32 %v1468_v11, %v684_v8  ;;  %1580 = vst [vmem:[%s2810_s22 + $0x68] sm:$0xff] %v1548_v13  ;;  %v1952_v19 = vadd.f32 %v1951_v14, %v1950_v9  ;;  %v694_v8 = vld [vmem:[%s2810_s22 + $0xc8] sm:$0xff] }
 0x1bf   : > { %v1953_v23 = vpop.f32.mrf.mxu0  ;;  %v2057_v25 = vpop.f32.mrf.mxu1  ;;  %v690_v14 = vld [vmem:[%s2810_s22 + $0xa8] sm:$0xff] }
 0x1c0   : > { %1582 = vst [vmem:[%s2810_s22 + $0x78] sm:$0xff] %v1550_v16  ;;  %v1473_v27 = vadd.f32 %v1952_v19, %v1472_v15  ;;  %v699_v16 = vld [vmem:[%s2810_s22 + $0xf0] sm:$0xff] }
 0x1c1   : > { %v1954_v29 = vpop.f32.mrf.mxu0  ;;  %v1475_v18 = vpop.f32.mrf.mxu1 }
 0x1c2   : > { %v1551_v20 = vadd.f32 %v1473_v27, %v685_v21  ;;  %v1955_v31 = vadd.f32 %v1954_v29, %v1953_v23  ;;  %v1997_v21 = vadd.f32 %v2935_v30, %v2933_v28 }
 0x1c3   : > { %v1956_v34 = vpop.f32.mrf.mxu0  ;;  %v2971_v35 = vpop.f32.mrf.mxu1 }
 0x1c4   : > { %1583 = vst [vmem:[%s2810_s22 + $0x80] sm:$0xff] %v1551_v20  ;;  %v1476_v36 = vadd.f32 %v1955_v31, %v1475_v18  ;;  %v691_v31 = vld [vmem:[%s2810_s22 + $0xb0] sm:$0xff] }
 0x1c5   : > { %v1957_v38 = vpop.f32.mrf.mxu0  ;;  %v1488_v39 = vpop.f32.mrf.mxu1 }
 0x1c6   : > { %v1552_v40 = vadd.f32 %v1476_v36, %v686_v33  ;;  %v1958_v41 = vadd.f32 %v1957_v38, %v1956_v34  ;;  %v700_v34 = vld [vmem:[%s2810_s22 + $0xf8] sm:$0xff] }
 0x1c7   : > { %v1959_v32 = vpop.f32.mrf.mxu0  ;;  %v2975_v37 = vpop.f32.mrf.mxu1 }
 0x1c8   : > { %1584 = vst [vmem:[%s2810_s22 + $0x88] sm:$0xff] %v1552_v40  ;;  %v1481_v44 = vadd.f32 %v2056_v10, %v1958_v41  ;;  %v698_v40 = vld [vmem:[%s2810_s22 + $0xe8] sm:$0xff] }
 0x1c9   : > { %v1960_v45 = vpop.f32.mrf.mxu0  ;;  %v1491_v46 = vpop.f32.mrf.mxu1 }
 0x1ca   : > { %v1553_v47 = vadd.f32 %v1481_v44, %v687_v42  ;;  %v1961_v48 = vadd.f32 %v1960_v45, %v1959_v32  ;;  %v692_v45 = vld [vmem:[%s2810_s22 + $0xb8] sm:$0xff] }
 0x1cb   : > { %v1962_v51 = vpop.f32.mrf.mxu0  ;;  %v2064_v53 = vpop.f32.mrf.mxu1 }
 0x1cc   : > { %1585 = vst [vmem:[%s2810_s22 + $0x90] sm:$0xff] %v1553_v47  ;;  %v1484_v54 = vadd.f32 %v2057_v25, %v1961_v48  ;;  %v1513_v43 = vadd.f32 %v2064_v53, %v2921_v7  ;;  %v697_v25 = vld [vmem:[%s2810_s22 + $0xe0] sm:$0xff] }
 0x1cd   : > { %v1963_v49 = vpop.f32.mrf.mxu0  ;;  %v1504_v56 = vpop.f32.mrf.mxu1 }
 0x1ce   : > { %v1554_v57 = vadd.f32 %v1484_v54, %v688_v50  ;;  %v1561_v58 = vadd.f32 %v1513_v43, %v695_v52  ;;  %v1964_v59 = vadd.f32 %v1963_v49, %v1962_v51  ;;  %v1505_v60 = vadd.f32 %v2917_v61, %v1504_v56 }
 0x1cf   : > { %v1965_v63 = vpop.f32.mrf.mxu0  ;;  %v2065_v1 = vpop.f32.mrf.mxu1 }
 0x1d0   : > { %1586 = vst [vmem:[%s2810_s22 + $0x98] sm:$0xff] %v1554_v57  ;;  %1593 = vst [vmem:[%s2810_s22 + $0xd0] sm:$0xff] %v1561_v58  ;;  %v1489_v3 = vadd.f32 %v1964_v59, %v1488_v39  ;;  %v1559_v7 = vadd.f32 %v1505_v60, %v693_v55  ;;  %v1516_v4 = vadd.f32 %v2065_v1, %v2923_v12 }
 0x1d1   : > { %v1966_v6 = vpop.f32.mrf.mxu0  ;;  %v1507_v61 = vpop.f32.mrf.mxu1 }
 0x1d2   : > { %v1555_v9 = vadd.f32 %v1489_v3, %v689_v62  ;;  %1591 = vst [vmem:[%s2810_s22 + $0xc0] sm:$0xff] %v1559_v7  ;;  %v1562_v10 = vadd.f32 %v1516_v4, %v696_v0  ;;  %v1967_v11 = vadd.f32 %v1966_v6, %v1965_v63  ;;  %v1508_v13 = vadd.f32 %v2919_v2, %v1507_v61 }
 0x1d3   : > { %v1968_v15 = vpop.f32.mrf.mxu0  ;;  %v2068_v19 = vpop.f32.mrf.mxu1 }
 0x1d4   : > { %1587 = vst [vmem:[%s2810_s22 + $0xa0] sm:$0xff] %v1555_v9  ;;  %1594 = vst [vmem:[%s2810_s22 + $0xd8] sm:$0xff] %v1562_v10  ;;  %v1492_v12 = vadd.f32 %v1967_v11, %v1491_v46  ;;  %v1560_v24 = vadd.f32 %v1508_v13, %v694_v8  ;;  %v1529_v26 = vadd.f32 %v2068_v19, %v1994_v5 }
 0x1d5   : > { %v1969_v23 = vpop.f32.mrf.mxu0  ;;  %v1520_v27 = vpop.f32.mrf.mxu1 }
 0x1d6   : > { %v1556_v2 = vadd.f32 %v1492_v12, %v690_v14  ;;  %1592 = vst [vmem:[%s2810_s22 + $0xc8] sm:$0xff] %v1560_v24  ;;  %v1565_v29 = vadd.f32 %v1529_v26, %v699_v16  ;;  %v1970_v18 = vadd.f32 %v1969_v23, %v1968_v15  ;;  %v1521_v20 = vadd.f32 %v2925_v17, %v1520_v27 }
 0x1d7   : > { %v1971_v33 = vpop.f32.mrf.mxu0  ;;  %v2069_v36 = vpop.f32.mrf.mxu1 }
 0x1d8   : > { %1588 = vst [vmem:[%s2810_s22 + $0xa8] sm:$0xff] %v1556_v2  ;;  %1597 = vst [vmem:[%s2810_s22 + $0xf0] sm:$0xff] %v1565_v29  ;;  %v1497_v28 = vadd.f32 %v2971_v35, %v1970_v18  ;;  %v1563_v30 = vadd.f32 %v1521_v20, %v697_v25  ;;  %v1532_v38 = vadd.f32 %v2069_v36, %v1997_v21 }
 0x1d9   : > { %v1972_v39 = vpop.f32.mrf.mxu0  ;;  %v1523_v41 = vpop.f32.mrf.mxu1 }
 0x1da   : > { %v1557_v17 = vadd.f32 %v1497_v28, %v691_v31  ;;  %1595 = vst [vmem:[%s2810_s22 + $0xe0] sm:$0xff] %v1563_v30  ;;  %v1566_v42 = vadd.f32 %v1532_v38, %v700_v34  ;;  %v1973_v32 = vadd.f32 %v1972_v39, %v1971_v33  ;;  %v1524_v44 = vadd.f32 %v2927_v22, %v1523_v41 }
 0x1dc   : > { %1589 = vst [vmem:[%s2810_s22 + $0xb0] sm:$0xff] %v1557_v17  ;;  %1598 = vst [vmem:[%s2810_s22 + $0xf8] sm:$0xff] %v1566_v42  ;;  %v1500_v35 = vadd.f32 %v2975_v37, %v1973_v32  ;;  %v1564_v46 = vadd.f32 %v1524_v44, %v698_v40 }
 0x1de   : > { %v1558_v47 = vadd.f32 %v1500_v35, %v692_v45  ;;  %1596 = vst [vmem:[%s2810_s22 + $0xe8] sm:$0xff] %v1564_v46 }
 0x1e0   : > { %1590 = vst [vmem:[%s2810_s22 + $0xb8] sm:$0xff] %v1558_v47 }
 0x1e1   : > { %2299 = shalt.err (!%p2296_p2)
}
 0x1e2   : > { %s2300_s22 = scalar_lea.hbm %s3020_s20, 4096  ;;  %s2304_s4 = scalar_lea.hbm %s3094_s3, 12288 }
 0x1e3   : > { %p2301_p3 = scmp.ne.s32.totalorder %s3020_s20, %s2300_s22  ;;  %p2305_p6 = scmp.lt.s32.totalorder %s3020_s20, %s3094_s3 }
 0x1e4   : > { %p2306_p7 = scmp.lt.s32.totalorder %s2304_s4, %s2300_s22 }
 0x1e5   : > { %p2302_p4 = pnand %p2301_p3, %p2538_p0 }
 0x1e6   : > { %p2307_p8 = por %p2306_p7, %p2305_p6 }
 0x1e7   : > { %p2303_p5 = pneg %p2302_p4 }
 0x1e9   : > { %p2308_p9 = pnand %p2307_p8, %p2303_p5 }
 0x1eb   : > { %2311 = shalt.err (!%p2308_p9)
}
 0x1ec   : > { %s2413_s7 = smov 128   ;;  %s2414_s1 = smov 384  }
 0x1ed   : > { %s2415_s17 = smov 8  }
 0x1ee   : > { %2091 = dma.vmem_to_hbm [thread:$0]  (%p2538_p0), %s3022_s15, 4096, %s3020_s20, %s3028_s0, %s2413_s7, %s2414_s1, %s2415_s17  }
 0x1ef PF: > { %p2098_p10 = scmp.ge.s32.totalorder %s2410_s23, 2  ;;  %s1630_s19 = sand.u32 1, %s2366_s12  }
 0x1f0   : > { %s1631_s8 = scalar_lea.sflag [#allocation5], %s1630_s19 }
 0x1f1   : > { %p2094_p11 = pnand %p2098_p10, %p2542_p1 }
 0x1f3   : > { %p2095_p12 = pneg %p2094_p11 }
 0x1f5   : > { %2361 = dma.done.wait (%p2095_p12), %s1631_s8, 4096  }
 0x1f6   : > { %2363 = vsyncadd (%p2095_p12), %s1631_s8, 4294963200  ;;  %s16_s23 = sadd.s32 1, %s2410_s23   ;;  %s3109_s20 = sld [smem:[#allocation7_spill]] }
 0x1f7   : > { %p13_p13 = scmp.ge.s32.totalorder %s16_s23, 8   ;;  %s3110_s28 = sld [smem:[#allocation8_spill]] }
 0x1f8   : > { %s3111_s22 = sld [smem:[#allocation9_spill]]  ;;  %s3112_s12 = smov %s2370_s13 }
 0x1f9   : > { %s3113_s13 = smov %s2374_s14  ;;  %s3114_s14 = smov %s2529_s10 }
 0x1fa   : > { %s3115_s15 = smov %s2382_s16  ;;  %s3116_s16 = smov %s2532_s11 }
 0x1fb   : > { %s3117_s17 = smov %s2390_s18  ;;  %s3118_s18 = smov %s2519_s5 }
 0x1fc   : > { %s3119_s19 = smov %s2402_s21  ;;  %15 = sbr.rel (!%p13_p13) target bundleno = 10 (0xa), region = 160 }
 0x1fd   : > { %s3120_s21 = smov %s3110_s28 }
 0x201   :  { %1636 = vsyncpa [#allocation5], 1 }
 0x202   :  { %1638 = vsyncpa [#allocation5 + $0x1], 1 }

</bundles_post_ra>
